<compile_context>
chip_gen: v7x
topology: tpu7x:2x2x1
jax: 0.10.0
libtpu: 0.0.40
codegen_flags: <defaults>
</compile_context>

<pallas_src>
import functools

import jax
import jax.numpy as jnp
import numpy as np
from jax import lax
from jax.experimental import pallas as pl
from jax.experimental.pallas import tpu as pltpu

LAMBDA_0 = 0.7
LAMBDA_1 = 0.3


def _loss_kernel(xu_ref, x_next_ref,
                 w_enc_ref, b_enc_ref,
                 w_comb_ref, b_comb_ref,
                 out_ref,
                 acc_pred_ref, acc_ae_ref,
                 *, n_xu, batch, tile, needs_mask, inv_pred, inv_ae):
    i = pl.program_id(0)

    @pl.when(i == 0)
    def _():
        acc_pred_ref[...] = jnp.zeros_like(acc_pred_ref)
        acc_ae_ref[...] = jnp.zeros_like(acc_ae_ref)

    xu = xu_ref[...]
    x_next = x_next_ref[...]

    # --- encoder ---------------------------------------------------------------
    z = jnp.dot(xu, w_enc_ref[...], preferred_element_type=jnp.float32) + b_enc_ref[...]

    # --- single fused MXU dispatch: decoders + state_decoder(theta(z) @ Xi) -----
    # dec[:, :n_xu] = z @ W_dec + b_dec                       (== cat(x_dec, u_dec))
    # dec[:, n_xu:] = xi0_f + z @ xi1_f + (z*z) @ xi2_f       (== x_pred)
    zz = jnp.concatenate([z, z * z], axis=-1)
    dec = jnp.dot(zz, w_comb_ref[...], preferred_element_type=jnp.float32) + b_comb_ref[...]

    d_ae = dec[:, :n_xu] - xu
    d_pred = dec[:, n_xu:] - x_next

    if needs_mask:
        # Partial last tile: Pallas pads the block; padded rows carry garbage
        # (and the biases make dec nonzero there), so select them out before
        # squaring.  Trace-time branch: no cost when B % tile == 0.
        rows_left = batch - i * tile
        row_ids = lax.broadcasted_iota(jnp.int32, (tile, 1), 0)
        valid = row_ids < rows_left
        d_ae = jnp.where(valid, d_ae, 0.0)
        d_pred = jnp.where(valid, d_pred, 0.0)

    # --- per-lane partial sums in VMEM (no cross-lane reduce / SMEM RMW here) ---
    acc_pred_ref[...] += jnp.sum(d_pred * d_pred, axis=0, keepdims=True)
    acc_ae_ref[...] += jnp.sum(d_ae * d_ae, axis=0, keepdims=True)

    # --- finalize: one cross-lane reduce + packed SMEM scalar writes ------------
    @pl.when(i == pl.num_programs(0) - 1)
    def _():
        lp = jnp.sum(acc_pred_ref[...])
        la = jnp.sum(acc_ae_ref[...])
        out_ref[0] = LAMBDA_0 * lp + LAMBDA_1 * la
        out_ref[1] = lp * inv_pred
        out_ref[2] = la * inv_ae


def grad_free_refinement_loss(xu, mu, x_next, params, *, block_b=8192):
    """Pallas wrapper. `mu` is accepted (like the torch forward) but unused."""
    del mu

    B, n_xu = xu.shape
    n_x = x_next.shape[1]
    d = params["w_enc"].shape[1]

    # --- one-time parameter algebra (off the per-step critical path) -----------
    w_dec = jnp.concatenate([params["w_sdec"], params["w_udec"]], axis=1)   # (d, n_xu)
    b_dec = jnp.concatenate([params["b_sdec"], params["b_udec"]], axis=1)   # (1, n_xu)
    xi0_f = params["xi0"] @ params["w_sdec"] + params["b_sdec"]             # (1, n_x)
    xi1_f = params["xi1"] @ params["w_sdec"]                                # (d, n_x)
    xi2_f = params["xi2"] @ params["w_sdec"]                                # (d, n_x)

    # Fused RHS / bias for the single post-encoder matmul:
    #   [z, z*z] @ [[w_dec, xi1_f], [0, xi2_f]] + [b_dec, xi0_f]
    w_comb = jnp.concatenate(
        [jnp.concatenate([w_dec, xi1_f], axis=1),
         jnp.concatenate([jnp.zeros((d, n_xu), jnp.float32), xi2_f], axis=1)],
        axis=0)                                                             # (2d, n_xu+n_x)
    b_comb = jnp.concatenate([b_dec, xi0_f], axis=1)                        # (1, n_xu+n_x)

    # --- batch tiling: stream tb-row tiles, mask the partial last tile ----------
    tb = min(block_b, B)
    if tb < B:
        tb = max(8, (tb // 8) * 8)        # (8, 128) sublane constraint
    grid = (pl.cdiv(B, tb),)
    needs_mask = (B % tb) != 0

    # VMEM budget: two streaming inputs, double-buffered, minor dim lane-padded
    # to 128 (~2 KiB/row) plus intermediates; keep >= the 32 MiB default floor.
    vmem_bytes = int(min(100 << 20, max(32 << 20, 6 * 1024 * tb)))

    kernel = functools.partial(
        _loss_kernel,
        n_xu=n_xu, batch=B, tile=tb, needs_mask=needs_mask,
        inv_pred=1.0 / float(x_next.size),
        inv_ae=1.0 / float(xu.size))

    const2 = lambda i: (0, 0)   # weights stay resident in VMEM across the grid

    out = pl.pallas_call(
        kernel,
        out_shape=jax.ShapeDtypeStruct((3,), jnp.float32),
        grid=grid,
        in_specs=[
            pl.BlockSpec((tb, n_xu), lambda i: (i, 0)),       # xu tile (streamed)
            pl.BlockSpec((tb, n_x), lambda i: (i, 0)),        # x_next tile (streamed)
            pl.BlockSpec((n_xu, d), const2),                  # w_enc
            pl.BlockSpec((1, d), const2),                     # b_enc
            pl.BlockSpec((2 * d, n_xu + n_x), const2),        # fused decoder/Xi RHS
            pl.BlockSpec((1, n_xu + n_x), const2),            # fused bias row
        ],
        out_specs=pl.BlockSpec((3,), lambda i: (0,),
                               memory_space=pltpu.MemorySpace.SMEM),
        scratch_shapes=[pltpu.VMEM((1, n_x), jnp.float32),    # per-lane loss_pred partials
                        pltpu.VMEM((1, n_xu), jnp.float32)],  # per-lane loss_AE partials
        compiler_params=pltpu.CompilerParams(
            dimension_semantics=("arbitrary",),
            vmem_limit_bytes=vmem_bytes),
    )(xu, x_next, params["w_enc"], params["b_enc"], w_comb, b_comb)

    return out[0], out[1], out[2]


def _reference(xu, x_next, p):
    """Pure-JAX reference matching the torch forward semantics (unfused)."""
    z = xu @ p["w_enc"] + p["b_enc"]
    x_dec = z @ p["w_sdec"] + p["b_sdec"]
    u_dec = z @ p["w_udec"] + p["b_udec"]
    theta = jnp.concatenate([jnp.ones((xu.shape[0], 1), jnp.float32), z, z * z], axis=1)
    xi = jnp.concatenate([p["xi0"], p["xi1"], p["xi2"]], axis=0)   # (n_lib, d)
    z_next = theta @ xi
    x_pred = z_next @ p["w_sdec"] + p["b_sdec"]
    loss_pred = jnp.sum((x_pred - x_next) ** 2)
    loss_ae = jnp.sum((jnp.concatenate([x_dec, u_dec], axis=1) - xu) ** 2)
    return (LAMBDA_0 * loss_pred + LAMBDA_1 * loss_ae,
            loss_pred / x_next.size,
            loss_ae / xu.size)


def _make_params(key, n_x, n_u, d):
    ks = jax.random.split(key, 9)
    s = 0.1
    return {
        "w_enc":  s * jax.random.normal(ks[0], (n_x + n_u, d), jnp.float32),
        "b_enc":  s * jax.random.normal(ks[1], (1, d), jnp.float32),
        "w_sdec": s * jax.random.normal(ks[2], (d, n_x), jnp.float32),
        "b_sdec": s * jax.random.normal(ks[3], (1, n_x), jnp.float32),
        "w_udec": s * jax.random.normal(ks[4], (d, n_u), jnp.float32),
        "b_udec": s * jax.random.normal(ks[5], (1, n_u), jnp.float32),
        # Xi = [xi0; xi1; xi2] with n_lib = 1 + d + d rows, d columns
        "xi0":    s * jax.random.normal(ks[6], (1, d), jnp.float32),
        "xi1":    s * jax.random.normal(ks[7], (d, d), jnp.float32),
        "xi2":    s * jax.random.normal(ks[8], (d, d), jnp.float32),
    }


def _check(got, exp):
    for g, e in zip(got, exp):
        np.testing.assert_allclose(np.asarray(g), np.asarray(e), rtol=1e-4, atol=1e-5)


if __name__ == "__main__":
    n_x, n_u, d = 8, 8, 8

    key = jax.random.PRNGKey(0)
    kp, kd = jax.random.split(key)
    params = _make_params(kp, n_x, n_u, d)

    # --- case 1: small batch (single grid step, whole-batch tile) ---------------
    B = 16
    k0, k1, k2 = jax.random.split(kd, 3)
    xu = jax.random.normal(k0, (B, n_x + n_u), jnp.float32)
    mu = jax.random.normal(k1, (B, n_u), jnp.float32)       # unused (as in torch)
    x_next = jax.random.normal(k2, (B, n_x), jnp.float32)

    out = jax.block_until_ready(grad_free_refinement_loss(xu, mu, x_next, params))
    _check(out, _reference(xu, x_next, params))

    # --- case 2: batch grid + VMEM partial-sum accumulation (4 full tiles) ------
    B2 = 64
    k3, k4, k5 = jax.random.split(k2, 3)
    xu2 = jax.random.normal(k3, (B2, n_x + n_u), jnp.float32)
    mu2 = jax.random.normal(k4, (B2, n_u), jnp.float32)
    x_next2 = jax.random.normal(k5, (B2, n_x), jnp.float32)

    out2 = jax.block_until_ready(
        grad_free_refinement_loss(xu2, mu2, x_next2, params, block_b=16))
    _check(out2, _reference(xu2, x_next2, params))

    # --- case 3: non-divisible batch (3 tiles, masked partial last tile) --------
    B3 = 44
    k6, k7, k8 = jax.random.split(k5, 3)
    xu3 = jax.random.normal(k6, (B3, n_x + n_u), jnp.float32)
    mu3 = jax.random.normal(k7, (B3, n_u), jnp.float32)
    x_next3 = jax.random.normal(k8, (B3, n_x), jnp.float32)

    out3 = jax.block_until_ready(
        grad_free_refinement_loss(xu3, mu3, x_next3, params, block_b=16))
    _check(out3, _reference(xu3, x_next3, params))

    print("KERNEL_OK")
</pallas_src>

<mosaic_0001>
module attributes {stable_mosaic.version = 11 : i64} {
  func.func @_loss_kernel(%arg0: i32, %arg1: memref<16x16xf32, #tpu.memory_space<vmem>>, %arg2: memref<16x8xf32, #tpu.memory_space<vmem>>, %arg3: memref<16x8xf32, #tpu.memory_space<vmem>>, %arg4: memref<1x8xf32, #tpu.memory_space<vmem>>, %arg5: memref<16x24xf32, #tpu.memory_space<vmem>>, %arg6: memref<1x24xf32, #tpu.memory_space<vmem>>, %arg7: memref<3xf32, #tpu.memory_space<smem>>, %arg8: memref<1x8xf32, #tpu.memory_space<vmem>>, %arg9: memref<1x16xf32, #tpu.memory_space<vmem>>) attributes {dimension_semantics = [#tpu.dimension_semantics<arbitrary>], iteration_bounds = array<i64: 1>, scalar_prefetch = 0 : i64, scratch_operands = 2 : i64, tpu.core_type = #tpu.core_type<tc>, window_params = [{transform_indices = @transform_0, window_bounds = array<i64: 16, 16>}, {transform_indices = @transform_1, window_bounds = array<i64: 16, 8>}, {pipeline_mode = #tpu.pipeline_mode<synchronous>, transform_indices = @transform_2, window_bounds = array<i64: 16, 8>}, {pipeline_mode = #tpu.pipeline_mode<synchronous>, transform_indices = @transform_3, window_bounds = array<i64: 1, 8>}, {pipeline_mode = #tpu.pipeline_mode<synchronous>, transform_indices = @transform_4, window_bounds = array<i64: 16, 24>}, {pipeline_mode = #tpu.pipeline_mode<synchronous>, transform_indices = @transform_5, window_bounds = array<i64: 1, 24>}, {transform_indices = @transform_6, window_bounds = array<i64: 3>}]} {
    %c0_i32 = arith.constant 0 : i32
    %0 = arith.cmpi eq, %arg0, %c0_i32 : i32
    %1 = arith.extui %0 : i1 to i32
    %c0_i32_0 = arith.constant 0 : i32
    %2 = arith.cmpi ne, %1, %c0_i32_0 : i32
    scf.if %2 {
      %cst_25 = arith.constant 0.000000e+00 : f32
      %36 = vector.broadcast %cst_25 : f32 to vector<1x8xf32>
      %c0_26 = arith.constant 0 : index
      %c0_27 = arith.constant 0 : index
      %37 = vector.load %arg8[%c0_26, %c0_27] : memref<1x8xf32, #tpu.memory_space<vmem>>, vector<1x8xf32>
      tpu.vector_store %arg8[%c0_26, %c0_27], %36 {strides = array<i32>} : memref<1x8xf32, #tpu.memory_space<vmem>>, vector<1x8xf32>,
      %cst_28 = arith.constant 0.000000e+00 : f32
      %38 = vector.broadcast %cst_28 : f32 to vector<1x16xf32>
      %c0_29 = arith.constant 0 : index
      %c0_30 = arith.constant 0 : index
      %39 = vector.load %arg9[%c0_29, %c0_30] : memref<1x16xf32, #tpu.memory_space<vmem>>, vector<1x16xf32>
      tpu.vector_store %arg9[%c0_29, %c0_30], %38 {strides = array<i32>} : memref<1x16xf32, #tpu.memory_space<vmem>>, vector<1x16xf32>,
    } else {
    }
    %c0 = arith.constant 0 : index
    %c0_1 = arith.constant 0 : index
    %3 = vector.load %arg1[%c0, %c0_1] : memref<16x16xf32, #tpu.memory_space<vmem>>, vector<16x16xf32>
    %c0_2 = arith.constant 0 : index
    %c0_3 = arith.constant 0 : index
    %4 = vector.load %arg2[%c0_2, %c0_3] : memref<16x8xf32, #tpu.memory_space<vmem>>, vector<16x8xf32>
    %c0_4 = arith.constant 0 : index
    %c0_5 = arith.constant 0 : index
    %5 = vector.load %arg3[%c0_4, %c0_5] : memref<16x8xf32, #tpu.memory_space<vmem>>, vector<16x8xf32>
    %cst = arith.constant dense<0.000000e+00> : vector<16x8xf32>
    %6 = tpu.matmul %3, %5, %cst {dimension_numbers = #tpu.dot_dimension_numbers<[1], [0], [0], [1], [0, 0, 1, 1], [], []>} : vector<16x16xf32>, vector<16x8xf32>, vector<16x8xf32> -> vector<16x8xf32>
    %c0_6 = arith.constant 0 : index
    %c0_7 = arith.constant 0 : index
    %7 = vector.load %arg4[%c0_6, %c0_7] : memref<1x8xf32, #tpu.memory_space<vmem>>, vector<1x8xf32>
    %8 = vector.broadcast %7 : vector<1x8xf32> to vector<16x8xf32>
    %9 = arith.addf %6, %8 : vector<16x8xf32>
    %10 = arith.mulf %9, %9 : vector<16x8xf32>
    %11 = tpu.concatenate %9, %10 in 1 : vector<16x8xf32>, vector<16x8xf32> -> vector<16x16xf32>
    %c0_8 = arith.constant 0 : index
    %c0_9 = arith.constant 0 : index
    %12 = vector.load %arg5[%c0_8, %c0_9] : memref<16x24xf32, #tpu.memory_space<vmem>>, vector<16x24xf32>
    %cst_10 = arith.constant dense<0.000000e+00> : vector<16x24xf32>
    %13 = tpu.matmul %11, %12, %cst_10 {dimension_numbers = #tpu.dot_dimension_numbers<[1], [0], [0], [1], [0, 0, 1, 1], [], []>} : vector<16x16xf32>, vector<16x24xf32>, vector<16x24xf32> -> vector<16x24xf32>
    %c0_11 = arith.constant 0 : index
    %c0_12 = arith.constant 0 : index
    %14 = vector.load %arg6[%c0_11, %c0_12] : memref<1x24xf32, #tpu.memory_space<vmem>>, vector<1x24xf32>
    %15 = vector.broadcast %14 : vector<1x24xf32> to vector<16x24xf32>
    %16 = arith.addf %13, %15 : vector<16x24xf32>
    %17 = vector.extract_strided_slice %16 {offsets = [0, 0], sizes = [16, 16], strides = [1, 1]} : vector<16x24xf32> to vector<16x16xf32>
    %18 = arith.subf %17, %3 : vector<16x16xf32>
    %19 = vector.extract_strided_slice %16 {offsets = [0, 16], sizes = [16, 8], strides = [1, 1]} : vector<16x24xf32> to vector<16x8xf32>
    %20 = arith.subf %19, %4 : vector<16x8xf32>
    %c0_13 = arith.constant 0 : index
    %c0_14 = arith.constant 0 : index
    %21 = vector.load %arg8[%c0_13, %c0_14] : memref<1x8xf32, #tpu.memory_space<vmem>>, vector<1x8xf32>
    %22 = arith.mulf %20, %20 : vector<16x8xf32>
    %cst_15 = arith.constant dense<0.000000e+00> : vector<8xf32>
    %23 = vector.multi_reduction <add>, %22, %cst_15 [0] : vector<16x8xf32> to vector<8xf32>
    %24 = vector.shape_cast %23 : vector<8xf32> to vector<1x8xf32>
    %25 = arith.addf %21, %24 : vector<1x8xf32>
    %c0_16 = arith.constant 0 : index
    %c0_17 = arith.constant 0 : index
    %26 = vector.load %arg8[%c0_16, %c0_17] : memref<1x8xf32, #tpu.memory_space<vmem>>, vector<1x8xf32>
    tpu.vector_store %arg8[%c0_16, %c0_17], %25 {strides = array<i32>} : memref<1x8xf32, #tpu.memory_space<vmem>>, vector<1x8xf32>,
    %c0_18 = arith.constant 0 : index
    %c0_19 = arith.constant 0 : index
    %27 = vector.load %arg9[%c0_18, %c0_19] : memref<1x16xf32, #tpu.memory_space<vmem>>, vector<1x16xf32>
    %28 = arith.mulf %18, %18 : vector<16x16xf32>
    %cst_20 = arith.constant dense<0.000000e+00> : vector<16xf32>
    %29 = vector.multi_reduction <add>, %28, %cst_20 [0] : vector<16x16xf32> to vector<16xf32>
    %30 = vector.shape_cast %29 : vector<16xf32> to vector<1x16xf32>
    %31 = arith.addf %27, %30 : vector<1x16xf32>
    %c0_21 = arith.constant 0 : index
    %c0_22 = arith.constant 0 : index
    %32 = vector.load %arg9[%c0_21, %c0_22] : memref<1x16xf32, #tpu.memory_space<vmem>>, vector<1x16xf32>
    tpu.vector_store %arg9[%c0_21, %c0_22], %31 {strides = array<i32>} : memref<1x16xf32, #tpu.memory_space<vmem>>, vector<1x16xf32>,
    %c0_i32_23 = arith.constant 0 : i32
    %33 = arith.cmpi eq, %arg0, %c0_i32_23 : i32
    %34 = arith.extui %33 : i1 to i32
    %c0_i32_24 = arith.constant 0 : i32
    %35 = arith.cmpi ne, %34, %c0_i32_24 : i32
    scf.if %35 {
      %c0_25 = arith.constant 0 : index
      %c0_26 = arith.constant 0 : index
      %36 = vector.load %arg8[%c0_25, %c0_26] : memref<1x8xf32, #tpu.memory_space<vmem>>, vector<1x8xf32>
      %37 = vector.shape_cast %36 : vector<1x8xf32> to vector<1x1x8xf32>
      %cst_27 = arith.constant dense<0.000000e+00> : vector<1xf32>
      %38 = vector.multi_reduction <add>, %37, %cst_27 [1, 2] : vector<1x1x8xf32> to vector<1xf32>
      %39 = vector.shape_cast %38 : vector<1xf32> to vector<1x1x1xf32>
      %40 = vector.extract %39[0, 0, 0] : f32 from vector<1x1x1xf32>
      %c0_28 = arith.constant 0 : index
      %c0_29 = arith.constant 0 : index
      %41 = vector.load %arg9[%c0_28, %c0_29] : memref<1x16xf32, #tpu.memory_space<vmem>>, vector<1x16xf32>
      %42 = vector.shape_cast %41 : vector<1x16xf32> to vector<1x1x16xf32>
      %cst_30 = arith.constant dense<0.000000e+00> : vector<1xf32>
      %43 = vector.multi_reduction <add>, %42, %cst_30 [1, 2] : vector<1x1x16xf32> to vector<1xf32>
      %44 = vector.shape_cast %43 : vector<1xf32> to vector<1x1x1xf32>
      %45 = vector.extract %44[0, 0, 0] : f32 from vector<1x1x1xf32>
      %cst_31 = arith.constant 0.699999988 : f32
      %46 = arith.mulf %cst_31, %40 : f32
      %cst_32 = arith.constant 3.000000e-01 : f32
      %47 = arith.mulf %cst_32, %45 : f32
      %48 = arith.addf %46, %47 : f32
      %c0_33 = arith.constant 0 : index
      %49 = memref.load %arg7[%c0_33] : memref<3xf32, #tpu.memory_space<smem>>
      memref.store %48, %arg7[%c0_33] : memref<3xf32, #tpu.memory_space<smem>>
      %cst_34 = arith.constant 7.812500e-03 : f32
      %50 = arith.mulf %40, %cst_34 : f32
      %c1 = arith.constant 1 : index
      %51 = memref.load %arg7[%c1] : memref<3xf32, #tpu.memory_space<smem>>
      memref.store %50, %arg7[%c1] : memref<3xf32, #tpu.memory_space<smem>>
      %cst_35 = arith.constant 3.906250e-03 : f32
      %52 = arith.mulf %45, %cst_35 : f32
      %c2 = arith.constant 2 : index
      %53 = memref.load %arg7[%c2] : memref<3xf32, #tpu.memory_space<smem>>
      memref.store %52, %arg7[%c2] : memref<3xf32, #tpu.memory_space<smem>>
    } else {
    }
    return
  }
  func.func @transform_0(%arg0: i32) -> (i32, i32) {
    %c0_i32 = arith.constant 0 : i32
    %c0_i32_0 = arith.constant 0 : i32
    return %arg0, %c0_i32 : i32, i32
  }
  func.func @transform_1(%arg0: i32) -> (i32, i32) {
    %c0_i32 = arith.constant 0 : i32
    %c0_i32_0 = arith.constant 0 : i32
    return %arg0, %c0_i32 : i32, i32
  }
  func.func @transform_2(%arg0: i32) -> (i32, i32) {
    %c0_i32 = arith.constant 0 : i32
    %c0_i32_0 = arith.constant 0 : i32
    %c0_i32_1 = arith.constant 0 : i32
    return %c0_i32, %c0_i32_0 : i32, i32
  }
  func.func @transform_3(%arg0: i32) -> (i32, i32) {
    %c0_i32 = arith.constant 0 : i32
    %c0_i32_0 = arith.constant 0 : i32
    %c0_i32_1 = arith.constant 0 : i32
    return %c0_i32, %c0_i32_0 : i32, i32
  }
  func.func @transform_4(%arg0: i32) -> (i32, i32) {
    %c0_i32 = arith.constant 0 : i32
    %c0_i32_0 = arith.constant 0 : i32
    %c0_i32_1 = arith.constant 0 : i32
    return %c0_i32, %c0_i32_0 : i32, i32
  }
  func.func @transform_5(%arg0: i32) -> (i32, i32) {
    %c0_i32 = arith.constant 0 : i32
    %c0_i32_0 = arith.constant 0 : i32
    %c0_i32_1 = arith.constant 0 : i32
    return %c0_i32, %c0_i32_0 : i32, i32
  }
  func.func @transform_6(%arg0: i32) -> i32 {
    %c0_i32 = arith.constant 0 : i32
    %c0_i32_0 = arith.constant 0 : i32
    return %c0_i32 : i32
  }
}

</mosaic_0001>

<bundles_post_ra>
// kernel: tpu_custom_call.1
= control target key start
LH: loop header
LB: loop body
LE: loop exit
PB: predicated region body
PF: predicated region fallthrough
CT: control target
= control target key end

     0   :  { %vm45_vm0 = vcmask 130048   ;;  %s493_s0 = inlined_call_operand.vmem [shape: f32[16,16], index: 0, kind: input, shape index: {}]   ;;  %s494_s1 = inlined_call_operand.vmem [shape: f32[16,8], index: 1, kind: input, shape index: {}]   ;;  %s495_s2 = inlined_call_operand.vmem [shape: f32[16,8], index: 2, kind: input, shape index: {}]   ;;  %s496_s3 = inlined_call_operand.vmem [shape: f32[1,8], index: 3, kind: input, shape index: {}]   ;;  %s497_s4 = inlined_call_operand.vmem [shape: f32[16,24], index: 4, kind: input, shape index: {}]   ;;  %s498_s5 = inlined_call_operand.vmem [shape: f32[1,24], index: 5, kind: input, shape index: {}]   ;;  %s499_s6 = inlined_call_operand.hbm [shape: f32[3], index: 6, kind: output, shape index: {}]  }
   0x1   :  { %v36_v0 = vld [vmem:[%s495_s2] sm:$0xff]  ;;  %v37_v1 = vld [vmem:[%s495_s2 + $0x8] sm:$0xff] }
   0x2   :  { %v32_v2 = vld [vmem:[%s493_s0] sm:$0xff]  ;;  %v368_v3 = vpack.c.bf16 %v37_v1, %v36_v0 }
   0x3   :  { %358 = vmatprep.mubr.msk.f32.mxu0 %vm45_vm0, %v32_v2 }
   0x4   :  { %11 = vsyncpa [#allocation5], 0  ;;  %369 = vmatprep.subr.bf16.mxu0 %v368_v3  ;;  %v33_v4 = vld [vmem:[%s493_s0 + $0x8] sm:$0xff]  ;;  %v140_v5 = vld [vmem:[%s497_s4] sm:$0xff]  ;;  %s398_s0 = smov 16   ;;  %vm137_vm1 = vcmask 64512   ;;  %v259_v47 = vlaneseq }
   0x5   :  { %371 = vmatpush3.bf16.msra.mxu0 %v368_v3  ;;  %v141_v6 = vld [vmem:[%s497_s4 + $0x8] sm:$0xff]  ;;  %v34_v8 = vld [vmem:[%s494_s1] sm:$0xff]  ;;  %s399_s4 = smov 8   ;;  %vm30_vm2 = vcmask 122880   ;;  %v400_v21 = vmov 0.0   ;;  %vm245_vm3 = vcmask 195712  }
   0x6   :  { %v372_v7 = vpack.c.bf16 %v141_v6, %v140_v5  ;;  %v340_v9 = vld [vmem:[%s496_s3] ss:$0 sm:$0xff]  ;;  %234 = vrot.lane.b32.xlu1 %v34_v8, %s398_s0  ;;  %v35_v11 = vld [vmem:[%s494_s1 + $0x8] sm:$0xff]  ;;  %31 = vst.msk [vmem:[#allocation3] sm:$0x1] %vm30_vm2, %v400_v21  ;;  %vm28_vm4 = vcmask 57344  }
   0x7   :  { %v343_v23 = vld [vmem:[%s498_s5] ss:$0 sm:$0xff]  ;;  %29 = vst.msk [vmem:[#allocation2] sm:$0x1] %vm28_vm4, %v400_v21  ;;  %v401_v45 = vmov 1966171168  }
   0x8   :  { %359 = vmatmul.mubr.msk.f32.vlgmr.msra.gmra.mrb[0].mxu0 %vm45_vm0, %v33_v4  ;;  %373 = vmatprep.subr.bf16.mxu1 %v372_v7  ;;  %v257_v46 = vunpack.c.l.s4 %v401_v45  ;;  %v260_v53 = vshrl.u32 %v259_v47, 7  ;;  %s402_s5 = smov 112   ;;  %s386_s23 = scalar_lea.hbm %s499_s6, 16 }
   0x9   :  { %375 = vmatpush3.bf16.msra.mxu1 %v372_v7  ;;  %p387_p0 = scmp.ne.s32.totalorder %s499_s6, %s386_s23  ;;  %p390_p1 = scmp.lt.u32.totalorder %s386_s23, %s499_s6 }
   0xa   :  { %236 = vrot.lane.b32.xlu1 %v35_v11, %s398_s0  ;;  %v258_v52 = vunpack.c.0.s8 %v257_v46 }
   0xb   :  { %p392_p2 = pnand %p390_p1, %p387_p0 }
   0xc   :  { %v261_v58 = vsub.s32 %v258_v52, %v260_v53 }
   0xd   :  { %v276_v59 = vld [vmem:[#allocation3] sm:$0x1] }
   0xe   :  { %v242_v3 = vld [vmem:[#allocation2] sm:$0x1] }
  0x78   :  { %v235_v22 = vpop.permute.xlu1 %234 }
  0x7c   :  { %v237_v25 = vpop.permute.xlu1 %236 }
  0xdb   :  { %v360_v10 = vpop.f32.mrb[0].mxu0 }
  0xdc   :  { %v118_v12 = vpop.f32.mrb[1].mxu0  ;;  %v124_v14 = vadd.f32 %v360_v10, %v340_v9 }
  0xdd   :  { %v119_v13 = vadd.f32 %v340_v9, %v118_v12 }
  0xde   :  { %v128_v16 = vmul.f32 %v124_v14, %v124_v14 }
  0xdf   :  { %v127_v15 = vmul.f32 %v119_v13, %v119_v13 }
  0xe1   :  { %131 = vrot.lane.b32.xlu0 %v127_v15, %s399_s4 }
  0xe5   :  { %133 = vrot.lane.b32.xlu0 %v128_v16, %s399_s4 }
 0x153   :  { %v132_v17 = vpop.permute.xlu0 %131 }
 0x154   :  { %v138_v18 = vsel %vm137_vm1, %v119_v13, %v132_v17 }
 0x155   :  { %365 = vmatprep.mubr.msk.f32.mxu1 %vm45_vm0, %v138_v18 }
 0x157   :  { %v134_v19 = vpop.permute.xlu0 %133 }
 0x158   :  { %v139_v20 = vsel %vm137_vm1, %v124_v14, %v134_v19 }
 0x159   :  { %366 = vmatmul.mubr.msk.f32.vlgmr.msra.gmra.mrb[0].mxu1 %vm45_vm0, %v139_v20 }
 0x22c   :  { %v367_v24 = vpop.f32.mrb[0].mxu1 }
 0x22d   :  { %v227_v26 = vadd.f32 %v367_v24, %v343_v23  ;;  %v221_v27 = vpop.f32.mrb[1].mxu1 }
 0x22e   :  { %v222_v28 = vadd.f32 %v343_v23, %v221_v27 }
 0x22f   :  { %v231_v29 = vsub.f32 %v227_v26, %v33_v4  ;;  %v241_v30 = vsub.f32 %v227_v26, %v237_v25 }
 0x230   :  { %v230_v31 = vsub.f32 %v222_v28, %v32_v2  ;;  %v240_v32 = vsub.f32 %v222_v28, %v235_v22 }
 0x231   :  { %v278_v33 = vmul.f32 %v231_v29, %v231_v29  ;;  %v244_v34 = vmul.f32 %v241_v30, %v241_v30 }
 0x232   :  { %v243_v35 = vmul.f32 %v240_v32, %v240_v32  ;;  %v277_v36 = vmul.f32 %v230_v31, %v230_v31 }
 0x233   :  { %v280_v37 = vsel %vm45_vm0, %v278_v33, 0.0  ;;  %v247_v38 = vsel %vm245_vm3, %v244_v34, 0.0 }
 0x234   :  { %v279_v39 = vsel %vm45_vm0, %v277_v36, 0.0  ;;  %v246_v40 = vsel %vm245_vm3, %v243_v35, 0.0 }
 0x235   :  { %v281_v41 = vadd.f32 %v280_v37, %v279_v39  ;;  %v248_v42 = vadd.f32 %v247_v38, %v246_v40 }
 0x237   :  { %v282_v43 = vrot.slane %v281_v41, 4  ;;  %v249_v44 = vrot.slane %v248_v42, 4 }
 0x239   :  { %v283_v48 = vadd.f32 %v282_v43, %v281_v41  ;;  %v250_v49 = vadd.f32 %v249_v44, %v248_v42 }
 0x23b   :  { %v284_v50 = vrot.slane %v283_v48, 2  ;;  %v251_v51 = vrot.slane %v250_v49, 2 }
 0x23d   :  { %v285_v54 = vadd.f32 %v284_v50, %v283_v48  ;;  %v252_v55 = vadd.f32 %v251_v51, %v250_v49 }
 0x23f   :  { %v286_v56 = vrot.slane %v285_v54, 1  ;;  %v253_v57 = vrot.slane %v252_v55, 1 }
 0x241   :  { %v287_v60 = vadd.f32 %v286_v56, %v285_v54  ;;  %v254_v61 = vadd.f32 %v253_v57, %v252_v55 }
 0x243   :  { %v262_v62 = vrot.slane %v254_v61, %v261_v58  ;;  %v288_v63 = vadd.f32 %v287_v60, %v276_v59 }
 0x245   :  { %v269_v0 = vrot.slane %v262_v62, %v261_v58  ;;  %290 = vst.msk [vmem:[#allocation3] sm:$0x1] %vm30_vm2, %v288_v63 }
 0x247   :  { %270 = vrot.lane.b32.xlu0 %v269_v0, %s402_s5 }
 0x24c   :  { %v305_v1 = vld [vmem:[#allocation3] sm:$0x1] }
 0x24d   :  { %v306_v2 = vsel %vm30_vm2, %v305_v1, 0.0 }
 0x266   :  { %307 = vadd.xlane.f32.xlu0 %v306_v2 }
 0x2b9   :  { %v271_v4 = vpop.permute.xlu0 %270 }
 0x2ba   :  { %v273_v5 = vadd.f32 %v271_v4, %v242_v3 }
 0x2bc   :  { %275 = vst.msk [vmem:[#allocation2] sm:$0x1] %vm28_vm4, %v273_v5 }
 0x2c3   :  { %v294_v6 = vld [vmem:[#allocation2] sm:$0x1] }
 0x2c4   :  { %v295_v7 = vsel %vm28_vm4, %v294_v6, 0.0 }
 0x2c5   :  { %296 = vadd.xlane.f32.xlu1 %v295_v7 }
 0x2f3   :  { %v308_v8 = vpop.xlane.xlu0 %307 }
 0x2f4   :  { %v309_v9 = vrot.slane %v308_v8, 4 }
 0x2f6   :  { %v310_v10 = vadd.f32 %v309_v9, %v308_v8 }
 0x2f8   :  { %v311_v11 = vrot.slane %v310_v10, 2 }
 0x2fa   :  { %v312_v15 = vadd.f32 %v311_v11, %v310_v10 }
 0x2fc   :  { %v313_v18 = vrot.slane %v312_v15, 1 }
 0x2fe   :  { %v314_v21 = vadd.f32 %v313_v18, %v312_v15 }
 0x352   :  { %v297_v12 = vpop.xlane.xlu1 %296 }
 0x353   :  { %v298_v13 = vrot.slane %v297_v12, 4 }
 0x355   :  { %v299_v14 = vadd.f32 %v298_v13, %v297_v12 }
 0x357   :  { %v300_v16 = vrot.slane %v299_v14, 2 }
 0x359   :  { %v301_v17 = vadd.f32 %v300_v16, %v299_v14 }
 0x35b   :  { %v302_v19 = vrot.slane %v301_v17, 1 }
 0x35d   :  { %v303_v20 = vadd.f32 %v302_v19, %v301_v17 }
 0x35f   :  { %376 = vpush %v303_v20 }
 0x360   :  { %378 = vpush %v314_v21 }
 0x390   :  { %s377_s14 = spop %376 }
 0x391   :  { %s316_s15 = smul.f32 0.7, %s377_s14  ;;  %s379_s16 = spop %378 }
 0x392   :  { %s321_s17 = smul.f32 0.0078125, %s377_s14 }
 0x393   :  { %s317_s18 = smul.f32 0.3, %s379_s16 }
 0x394   :  { %323 = sst [smem:[#allocation4 + $0x1]] %s321_s17  ;;  %s324_s19 = smul.f32 0.00390625, %s379_s16 }
 0x395   :  { %s318_s20 = sadd.f32 %s317_s18, %s316_s15 }
 0x396   :  { %326 = sst [smem:[#allocation4 + $0x2]] %s324_s19 }
 0x397   :  { %320 = sst [smem:[#allocation4]] %s318_s20 }
 0x398   :  { %395 = shalt.err (!%p392_p2)
}
 0x399   :  { %s403_s28 = smov [#allocation4]  }
 0x39a   :  { %334 = dma.smem_to_hbm %s403_s28, 16, %s499_s6, [#allocation5]  }
 0x39b   :  { %396 = dma.done.wait [#allocation5], 16  }
 0x39c   :  { %397 = vsyncadd [#allocation5], 4294967280 }
 0x39d   :  { %338 = sfence }
 0x39e   :  { %339 = vsyncpa [#allocation5], 1 }

</bundles_post_ra>
